<compile_context>
chip_gen: v5e
topology: v5e:2x2
jax: 0.10.0
libtpu: 0.0.40
codegen_flags: <defaults>
</compile_context>

<pallas_src>
import jax
import jax.numpy as jnp
from jax.experimental import pallas as pl
from jax.experimental.pallas import tpu as pltpu


def cbow_loss_kernel(ctx_ref, tgt_ref, emb_ref, out_ref, acc_ref):
    v_idx = pl.program_id(0)
    n_v = pl.num_programs(0)

    B, C = ctx_ref.shape
    TV, D = emb_ref.shape

    @pl.when(v_idx == 0)
    def _init():
        acc_ref[...] = jnp.zeros_like(acc_ref)

    ctx = ctx_ref[...]                      # (B, C) int32
    tgt = tgt_ref[...]                      # (B, 1) int32

    # Global vocab ids covered by this V-tile, laid out along lanes.
    v_off = v_idx * TV
    iota_bv = jax.lax.broadcasted_iota(jnp.int32, (B, TV), 1) + v_off

    # counts[b, j] = #occurrences of vocab id (v_off + j) in row b's context.
    # Unmasked accumulation: padding tokens (id 0) all land in global column 0,
    # which is zeroed afterwards (a no-op on every tile but the first).
    counts = jnp.zeros((B, TV), dtype=jnp.float32)
    for c in range(C):                      # C is small & static -> unrolled
        counts = counts + (ctx[:, c:c + 1] == iota_bv).astype(jnp.float32)
    counts = jnp.where(iota_bv == 0, 0.0, counts)

    onehot_tgt = (tgt == iota_bv).astype(jnp.float32)            # (B, TV)

    # Single fused gather-matmul, accumulated over V tiles into VMEM scratch.
    lhs = jnp.concatenate([counts, onehot_tgt], axis=0)          # (2B, TV)
    acc_ref[...] += jnp.dot(lhs, emb_ref[...],
                            preferred_element_type=jnp.float32)  # (2B, D)

    @pl.when(v_idx == n_v - 1)
    def _finalize():
        pooled_sum = acc_ref[:B, :]                              # (B, D)
        tgt_emb = acc_ref[B:, :]                                 # (B, D)

        # pooled = (embeds * mask).sum(1) / (mask.sum(1) + 1e-6)
        mask_cnt = jnp.sum((ctx != 0).astype(jnp.float32), axis=1,
                           keepdims=True)                        # (B, 1)
        pooled = pooled_sum * pl.reciprocal(mask_cnt + 1e-6, approx=False)

        # cosine_similarity with PyTorch eps=1e-8: clamp the squared norms
        # at eps^2 and use EUP rsqrt instead of sqrt + divide.
        eps2 = jnp.float32(1e-16)
        dotp = jnp.sum(pooled * tgt_emb, axis=1, keepdims=True)  # (B, 1)
        pn2 = jnp.sum(pooled * pooled, axis=1, keepdims=True)
        tn2 = jnp.sum(tgt_emb * tgt_emb, axis=1, keepdims=True)
        cos = (dotp
               * jax.lax.rsqrt(jnp.maximum(pn2, eps2))
               * jax.lax.rsqrt(jnp.maximum(tn2, eps2)))          # (B, 1)

        # loss = -cos.mean()
        out_ref[0, 0] = -jnp.sum(cos) * (1.0 / B)


def classical_cbow_loss(contexts, targets, emb_table, *, v_tile=512):
    """contexts: (B, C) int, targets: (B,) int, emb_table: (V, D) f32."""
    B, C = contexts.shape
    V, D = emb_table.shape
    tv = V if V <= v_tile else v_tile
    assert V % tv == 0, "vocab size must be a multiple of the V tile"
    n_v = V // tv

    tgt2d = targets.reshape(B, 1).astype(jnp.int32)

    grid_spec = pltpu.PrefetchScalarGridSpec(
        num_scalar_prefetch=0,
        grid=(n_v,),
        in_specs=[
            # NOTE: indices are control data; at these toy shapes they sit in
            # lane-padded VMEM tiles (a DMA-gather design would put them in
            # SMEM via scalar prefetch).
            pl.BlockSpec((B, C), lambda v: (0, 0)),      # contexts (resident)
            pl.BlockSpec((B, 1), lambda v: (0, 0)),      # targets  (resident)
            pl.BlockSpec((tv, D), lambda v: (v, 0)),     # embedding V-tile
        ],
        out_specs=pl.BlockSpec((1, 1), lambda v: (0, 0),
                               memory_space=pltpu.SMEM),
        scratch_shapes=[pltpu.VMEM((2 * B, D), jnp.float32)],
    )

    out = pl.pallas_call(
        cbow_loss_kernel,
        out_shape=jax.ShapeDtypeStruct((1, 1), jnp.float32),
        grid_spec=grid_spec,
        compiler_params=pltpu.CompilerParams(
            dimension_semantics=("arbitrary",)),
    )(contexts.astype(jnp.int32), tgt2d, emb_table)
    return out[0, 0]


def reference_loss(contexts, targets, emb_table):
    embeds = emb_table[contexts]                                   # (B, C, D)
    mask = (contexts != 0).astype(jnp.float32)[..., None]          # (B, C, 1)
    pooled = (embeds * mask).sum(1) / (mask.sum(1) + 1e-6)         # (B, D)
    tgt_emb = emb_table[targets]                                   # (B, D)
    eps = 1e-8
    dot = jnp.sum(pooled * tgt_emb, axis=-1)
    pn = jnp.maximum(jnp.linalg.norm(pooled, axis=-1), eps)
    tn = jnp.maximum(jnp.linalg.norm(tgt_emb, axis=-1), eps)
    return -jnp.mean(dot / (pn * tn))


if __name__ == "__main__":
    key = jax.random.PRNGKey(0)
    k_emb, k_ctx, k_tgt = jax.random.split(key, 3)

    vocab_size = 64
    embed_dim = 32
    batch = 8
    context_len = 8

    # nn.init.xavier_normal_ on the (V, D) embedding weight:
    # std = sqrt(2 / (fan_in + fan_out)) with fan_in=D, fan_out=V
    std = (2.0 / (vocab_size + embed_dim)) ** 0.5
    emb_table = (jax.random.normal(k_emb, (vocab_size, embed_dim),
                                   dtype=jnp.float32) * std)

    contexts = jax.random.randint(k_ctx, (batch, context_len), 0, vocab_size,
                                  dtype=jnp.int32)
    targets = jax.random.randint(k_tgt, (batch,), 1, vocab_size,
                                 dtype=jnp.int32)

    loss = classical_cbow_loss(contexts, targets, emb_table)
    loss = jax.block_until_ready(loss)

    ref = reference_loss(contexts, targets, emb_table)
    assert jnp.allclose(loss, ref, rtol=1e-5, atol=1e-5), (loss, ref)

    print("KERNEL_OK")
</pallas_src>

<mosaic_0001>
module attributes {stable_mosaic.version = 11 : i64} {
  func.func @cbow_loss_kernel(%arg0: i32, %arg1: memref<8x8xi32, #tpu.memory_space<vmem>>, %arg2: memref<8x1xi32, #tpu.memory_space<vmem>>, %arg3: memref<64x32xf32, #tpu.memory_space<vmem>>, %arg4: memref<1x1xf32, #tpu.memory_space<smem>>, %arg5: memref<16x32xf32, #tpu.memory_space<vmem>>) attributes {dimension_semantics = [#tpu.dimension_semantics<arbitrary>], iteration_bounds = array<i64: 1>, scalar_prefetch = 0 : i64, scratch_operands = 1 : i64, tpu.core_type = #tpu.core_type<tc>, window_params = [{pipeline_mode = #tpu.pipeline_mode<synchronous>, transform_indices = @transform_0, window_bounds = array<i64: 8, 8>}, {pipeline_mode = #tpu.pipeline_mode<synchronous>, transform_indices = @transform_1, window_bounds = array<i64: 8, 1>}, {transform_indices = @transform_2, window_bounds = array<i64: 64, 32>}, {transform_indices = @transform_3, window_bounds = array<i64: 1, 1>}]} {
    %c0_i32 = arith.constant 0 : i32
    %0 = arith.cmpi eq, %arg0, %c0_i32 : i32
    %1 = arith.extui %0 : i1 to i32
    %c0_i32_0 = arith.constant 0 : i32
    %2 = arith.cmpi ne, %1, %c0_i32_0 : i32
    scf.if %2 {
      %cst_15 = arith.constant 0.000000e+00 : f32
      %75 = vector.broadcast %cst_15 : f32 to vector<16x32xf32>
      %c0_16 = arith.constant 0 : index
      %c0_17 = arith.constant 0 : index
      %76 = vector.load %arg5[%c0_16, %c0_17] : memref<16x32xf32, #tpu.memory_space<vmem>>, vector<16x32xf32>
      tpu.vector_store %arg5[%c0_16, %c0_17], %75 {strides = array<i32>} : memref<16x32xf32, #tpu.memory_space<vmem>>, vector<16x32xf32>,
    } else {
    }
    %c0 = arith.constant 0 : index
    %c0_1 = arith.constant 0 : index
    %3 = vector.load %arg1[%c0, %c0_1] : memref<8x8xi32, #tpu.memory_space<vmem>>, vector<8x8xi32>
    %c0_2 = arith.constant 0 : index
    %c0_3 = arith.constant 0 : index
    %4 = vector.load %arg2[%c0_2, %c0_3] : memref<8x1xi32, #tpu.memory_space<vmem>>, vector<8x1xi32>
    %c64_i32 = arith.constant 64 : i32
    %5 = arith.muli %arg0, %c64_i32 : i32
    %6 = tpu.iota {dimensions = array<i32: 1>} : vector<8x64xi32>
    %7 = vector.broadcast %5 : i32 to vector<8x64xi32>
    %8 = arith.addi %6, %7 : vector<8x64xi32>
    %cst = arith.constant 0.000000e+00 : f32
    %9 = vector.broadcast %cst : f32 to vector<8x64xf32>
    %10 = vector.extract_strided_slice %3 {offsets = [0, 0], sizes = [8, 1], strides = [1, 1]} : vector<8x8xi32> to vector<8x1xi32>
    %11 = vector.broadcast %10 : vector<8x1xi32> to vector<8x64xi32>
    %12 = arith.cmpi eq, %11, %8 : vector<8x64xi32>
    %13 = arith.extui %12 : vector<8x64xi1> to vector<8x64xi32>
    %14 = arith.sitofp %13 : vector<8x64xi32> to vector<8x64xf32>
    %15 = arith.addf %9, %14 : vector<8x64xf32>
    %16 = vector.extract_strided_slice %3 {offsets = [0, 1], sizes = [8, 1], strides = [1, 1]} : vector<8x8xi32> to vector<8x1xi32>
    %17 = vector.broadcast %16 : vector<8x1xi32> to vector<8x64xi32>
    %18 = arith.cmpi eq, %17, %8 : vector<8x64xi32>
    %19 = arith.extui %18 : vector<8x64xi1> to vector<8x64xi32>
    %20 = arith.sitofp %19 : vector<8x64xi32> to vector<8x64xf32>
    %21 = arith.addf %15, %20 : vector<8x64xf32>
    %22 = vector.extract_strided_slice %3 {offsets = [0, 2], sizes = [8, 1], strides = [1, 1]} : vector<8x8xi32> to vector<8x1xi32>
    %23 = vector.broadcast %22 : vector<8x1xi32> to vector<8x64xi32>
    %24 = arith.cmpi eq, %23, %8 : vector<8x64xi32>
    %25 = arith.extui %24 : vector<8x64xi1> to vector<8x64xi32>
    %26 = arith.sitofp %25 : vector<8x64xi32> to vector<8x64xf32>
    %27 = arith.addf %21, %26 : vector<8x64xf32>
    %28 = vector.extract_strided_slice %3 {offsets = [0, 3], sizes = [8, 1], strides = [1, 1]} : vector<8x8xi32> to vector<8x1xi32>
    %29 = vector.broadcast %28 : vector<8x1xi32> to vector<8x64xi32>
    %30 = arith.cmpi eq, %29, %8 : vector<8x64xi32>
    %31 = arith.extui %30 : vector<8x64xi1> to vector<8x64xi32>
    %32 = arith.sitofp %31 : vector<8x64xi32> to vector<8x64xf32>
    %33 = arith.addf %27, %32 : vector<8x64xf32>
    %34 = vector.extract_strided_slice %3 {offsets = [0, 4], sizes = [8, 1], strides = [1, 1]} : vector<8x8xi32> to vector<8x1xi32>
    %35 = vector.broadcast %34 : vector<8x1xi32> to vector<8x64xi32>
    %36 = arith.cmpi eq, %35, %8 : vector<8x64xi32>
    %37 = arith.extui %36 : vector<8x64xi1> to vector<8x64xi32>
    %38 = arith.sitofp %37 : vector<8x64xi32> to vector<8x64xf32>
    %39 = arith.addf %33, %38 : vector<8x64xf32>
    %40 = vector.extract_strided_slice %3 {offsets = [0, 5], sizes = [8, 1], strides = [1, 1]} : vector<8x8xi32> to vector<8x1xi32>
    %41 = vector.broadcast %40 : vector<8x1xi32> to vector<8x64xi32>
    %42 = arith.cmpi eq, %41, %8 : vector<8x64xi32>
    %43 = arith.extui %42 : vector<8x64xi1> to vector<8x64xi32>
    %44 = arith.sitofp %43 : vector<8x64xi32> to vector<8x64xf32>
    %45 = arith.addf %39, %44 : vector<8x64xf32>
    %46 = vector.extract_strided_slice %3 {offsets = [0, 6], sizes = [8, 1], strides = [1, 1]} : vector<8x8xi32> to vector<8x1xi32>
    %47 = vector.broadcast %46 : vector<8x1xi32> to vector<8x64xi32>
    %48 = arith.cmpi eq, %47, %8 : vector<8x64xi32>
    %49 = arith.extui %48 : vector<8x64xi1> to vector<8x64xi32>
    %50 = arith.sitofp %49 : vector<8x64xi32> to vector<8x64xf32>
    %51 = arith.addf %45, %50 : vector<8x64xf32>
    %52 = vector.extract_strided_slice %3 {offsets = [0, 7], sizes = [8, 1], strides = [1, 1]} : vector<8x8xi32> to vector<8x1xi32>
    %53 = vector.broadcast %52 : vector<8x1xi32> to vector<8x64xi32>
    %54 = arith.cmpi eq, %53, %8 : vector<8x64xi32>
    %55 = arith.extui %54 : vector<8x64xi1> to vector<8x64xi32>
    %56 = arith.sitofp %55 : vector<8x64xi32> to vector<8x64xf32>
    %57 = arith.addf %51, %56 : vector<8x64xf32>
    %c0_i32_4 = arith.constant 0 : i32
    %58 = vector.broadcast %c0_i32_4 : i32 to vector<8x64xi32>
    %59 = arith.cmpi eq, %8, %58 : vector<8x64xi32>
    %cst_5 = arith.constant 0.000000e+00 : f32
    %60 = vector.broadcast %cst_5 : f32 to vector<8x64xf32>
    %61 = arith.select %59, %60, %57 : vector<8x64xi1>, vector<8x64xf32>
    %62 = vector.broadcast %4 : vector<8x1xi32> to vector<8x64xi32>
    %63 = arith.cmpi eq, %62, %8 : vector<8x64xi32>
    %64 = arith.extui %63 : vector<8x64xi1> to vector<8x64xi32>
    %65 = arith.sitofp %64 : vector<8x64xi32> to vector<8x64xf32>
    %66 = tpu.concatenate %61, %65 in 0 : vector<8x64xf32>, vector<8x64xf32> -> vector<16x64xf32>
    %c0_6 = arith.constant 0 : index
    %c0_7 = arith.constant 0 : index
    %67 = vector.load %arg5[%c0_6, %c0_7] : memref<16x32xf32, #tpu.memory_space<vmem>>, vector<16x32xf32>
    %c0_8 = arith.constant 0 : index
    %c0_9 = arith.constant 0 : index
    %68 = vector.load %arg3[%c0_8, %c0_9] : memref<64x32xf32, #tpu.memory_space<vmem>>, vector<64x32xf32>
    %cst_10 = arith.constant dense<0.000000e+00> : vector<16x32xf32>
    %69 = tpu.matmul %66, %68, %cst_10 {dimension_numbers = #tpu.dot_dimension_numbers<[1], [0], [0], [1], [0, 0, 1, 1], [], []>} : vector<16x64xf32>, vector<64x32xf32>, vector<16x32xf32> -> vector<16x32xf32>
    %70 = arith.addf %67, %69 : vector<16x32xf32>
    %c0_11 = arith.constant 0 : index
    %c0_12 = arith.constant 0 : index
    %71 = vector.load %arg5[%c0_11, %c0_12] : memref<16x32xf32, #tpu.memory_space<vmem>>, vector<16x32xf32>
    tpu.vector_store %arg5[%c0_11, %c0_12], %70 {strides = array<i32>} : memref<16x32xf32, #tpu.memory_space<vmem>>, vector<16x32xf32>,
    %c0_i32_13 = arith.constant 0 : i32
    %72 = arith.cmpi eq, %arg0, %c0_i32_13 : i32
    %73 = arith.extui %72 : i1 to i32
    %c0_i32_14 = arith.constant 0 : i32
    %74 = arith.cmpi ne, %73, %c0_i32_14 : i32
    scf.if %74 {
      %c0_15 = arith.constant 0 : index
      %c0_16 = arith.constant 0 : index
      %75 = vector.load %arg5[%c0_15, %c0_16] : memref<16x32xf32, #tpu.memory_space<vmem>>, vector<8x32xf32>
      %c8 = arith.constant 8 : index
      %c0_17 = arith.constant 0 : index
      %76 = vector.load %arg5[%c8, %c0_17] : memref<16x32xf32, #tpu.memory_space<vmem>>, vector<8x32xf32>
      %c0_i32_18 = arith.constant 0 : i32
      %77 = vector.broadcast %c0_i32_18 : i32 to vector<8x8xi32>
      %78 = arith.cmpi ne, %3, %77 : vector<8x8xi32>
      %79 = arith.extui %78 : vector<8x8xi1> to vector<8x8xi32>
      %80 = arith.sitofp %79 : vector<8x8xi32> to vector<8x8xf32>
      %cst_19 = arith.constant dense<0.000000e+00> : vector<8xf32>
      %81 = vector.multi_reduction <add>, %80, %cst_19 [1] : vector<8x8xf32> to vector<8xf32>
      %82 = vector.shape_cast %81 : vector<8xf32> to vector<8x1xf32>
      %cst_20 = arith.constant 9.99999997E-7 : f32
      %83 = vector.broadcast %cst_20 : f32 to vector<8x1xf32>
      %84 = arith.addf %82, %83 : vector<8x1xf32>
      %85 = tpu.reciprocal %84 : vector<8x1xf32> -> vector<8x1xf32>
      %86 = vector.broadcast %85 : vector<8x1xf32> to vector<8x32xf32>
      %87 = arith.mulf %75, %86 : vector<8x32xf32>
      %88 = arith.mulf %87, %76 : vector<8x32xf32>
      %cst_21 = arith.constant dense<0.000000e+00> : vector<8xf32>
      %89 = vector.multi_reduction <add>, %88, %cst_21 [1] : vector<8x32xf32> to vector<8xf32>
      %90 = vector.shape_cast %89 : vector<8xf32> to vector<8x1xf32>
      %91 = arith.mulf %87, %87 : vector<8x32xf32>
      %cst_22 = arith.constant dense<0.000000e+00> : vector<8xf32>
      %92 = vector.multi_reduction <add>, %91, %cst_22 [1] : vector<8x32xf32> to vector<8xf32>
      %93 = vector.shape_cast %92 : vector<8xf32> to vector<8x1xf32>
      %94 = arith.mulf %76, %76 : vector<8x32xf32>
      %cst_23 = arith.constant dense<0.000000e+00> : vector<8xf32>
      %95 = vector.multi_reduction <add>, %94, %cst_23 [1] : vector<8x32xf32> to vector<8xf32>
      %96 = vector.shape_cast %95 : vector<8xf32> to vector<8x1xf32>
      %cst_24 = arith.constant 1.000000e-16 : f32
      %97 = vector.broadcast %cst_24 : f32 to vector<8x1xf32>
      %98 = arith.maximumf %93, %97 : vector<8x1xf32>
      %99 = math.rsqrt %98 : vector<8x1xf32>
      %100 = arith.mulf %90, %99 : vector<8x1xf32>
      %cst_25 = arith.constant 1.000000e-16 : f32
      %101 = vector.broadcast %cst_25 : f32 to vector<8x1xf32>
      %102 = arith.maximumf %96, %101 : vector<8x1xf32>
      %103 = math.rsqrt %102 : vector<8x1xf32>
      %104 = arith.mulf %100, %103 : vector<8x1xf32>
      %105 = vector.shape_cast %104 : vector<8x1xf32> to vector<1x8x1xf32>
      %cst_26 = arith.constant dense<0.000000e+00> : vector<1xf32>
      %106 = vector.multi_reduction <add>, %105, %cst_26 [1, 2] : vector<1x8x1xf32> to vector<1xf32>
      %107 = vector.shape_cast %106 : vector<1xf32> to vector<1x1x1xf32>
      %108 = vector.extract %107[0, 0, 0] : f32 from vector<1x1x1xf32>
      %cst_27 = arith.constant 0.000000e+00 : f32
      %109 = arith.subf %cst_27, %108 : f32
      %cst_28 = arith.constant 1.250000e-01 : f32
      %110 = arith.mulf %109, %cst_28 : f32
      %c0_29 = arith.constant 0 : index
      %c0_30 = arith.constant 0 : index
      %111 = memref.load %arg4[%c0_29, %c0_30] : memref<1x1xf32, #tpu.memory_space<smem>>
      memref.store %110, %arg4[%c0_29, %c0_30] : memref<1x1xf32, #tpu.memory_space<smem>>
    } else {
    }
    return
  }
  func.func @transform_0(%arg0: i32) -> (i32, i32) {
    %c0_i32 = arith.constant 0 : i32
    %c0_i32_0 = arith.constant 0 : i32
    %c0_i32_1 = arith.constant 0 : i32
    return %c0_i32, %c0_i32_0 : i32, i32
  }
  func.func @transform_1(%arg0: i32) -> (i32, i32) {
    %c0_i32 = arith.constant 0 : i32
    %c0_i32_0 = arith.constant 0 : i32
    %c0_i32_1 = arith.constant 0 : i32
    return %c0_i32, %c0_i32_0 : i32, i32
  }
  func.func @transform_2(%arg0: i32) -> (i32, i32) {
    %c0_i32 = arith.constant 0 : i32
    %c0_i32_0 = arith.constant 0 : i32
    return %arg0, %c0_i32 : i32, i32
  }
  func.func @transform_3(%arg0: i32) -> (i32, i32) {
    %c0_i32 = arith.constant 0 : i32
    %c0_i32_0 = arith.constant 0 : i32
    %c0_i32_1 = arith.constant 0 : i32
    return %c0_i32, %c0_i32_0 : i32, i32
  }
}

</mosaic_0001>

<bundles_post_ra>
// kernel: tpu_custom_call.1
= control target key start
LH: loop header
LB: loop body
LE: loop exit
PB: predicated region body
PF: predicated region fallthrough
CT: control target
= control target key end

     0   :  { %v293_v1 = vmov 0   ;;  %v294_v2 = vmov 2   ;;  %s363_s0 = inlined_call_operand.vmem [shape: s32[8,8], index: 0, kind: input, shape index: {}]   ;;  %s364_s1 = inlined_call_operand.vmem [shape: s32[8,1], index: 1, kind: input, shape index: {}]   ;;  %s365_s2 = inlined_call_operand.vmem [shape: f32[64,32], index: 2, kind: input, shape index: {}]   ;;  %s366_s3 = inlined_call_operand.hbm [shape: f32[1,1], index: 3, kind: output, shape index: {}]  }
   0x1   :  { %v22_v0 = vld [vmem:[%s363_s0] sm:$0xff]  ;;  %264 = vset.pattern.permute.xlu0 %v293_v1  ;;  %266 = vset.pattern.permute.xlu1 %v294_v2 }
   0x2   :  { %8 = vsyncpa [#allocation4], 0  ;;  %30 = vperm.xlu0 %264, %v22_v0   ;;  %44 = vperm.xlu1 %266, %v22_v0   ;;  %v295_v3 = vmov 4   ;;  %v296_v4 = vmov 1   ;;  %v297_v5 = vmov 3   ;;  %v298_v6 = vmov 5  }
   0x3   :  { %268 = vset.pattern.permute.xlu2 %v295_v3  ;;  %v23_v7 = vld [vmem:[%s364_s1] sm:$0xff]  ;;  %v299_v8 = vmov 6   ;;  %v300_v9 = vmov 7   ;;  %v102_v10 = vld [vmem:[%s365_s2 + $0x38] sm:$0xff]  ;;  %v101_v11 = vld [vmem:[%s365_s2 + $0x30] sm:$0xff]  ;;  %vm143_vm0 = vcmp.ne.s32.totalorder %v22_v0, 0  ;;  %v25_v22 = vlaneseq }
   0x4   :  { %58 = vperm.xlu2 %268, %v22_v0   ;;  %244 = vmatpush.msra.mxu1 %v102_v10  ;;  %v100_v12 = vld [vmem:[%s365_s2 + $0x28] sm:$0xff]  ;;  %v99_v13 = vld [vmem:[%s365_s2 + $0x20] sm:$0xff]  ;;  %v98_v14 = vld [vmem:[%s365_s2 + $0x18] sm:$0xff]  ;;  %v301_v15 = vmov 0.0   ;;  %vm146_vm1 = vcmask 64512   ;;  %vm103_vm9 = vcmask 523264  }
   0x5   :  { %118 = vmatpush.msra.mxu0 %v102_v10  ;;  %v243_v16 = vsel %vm143_vm0, 1.0, %v301_v15  ;;  %v97_v18 = vld [vmem:[%s365_s2 + $0x10] sm:$0xff]  ;;  %v96_v19 = vld [vmem:[%s365_s2 + $0x8] sm:$0xff]  ;;  %v95_v20 = vld [vmem:[%s365_s2] sm:$0xff]  ;;  %v26_v25 = vand.u32 127, %v25_v22  ;;  %vm19_vm13 = vcmask 261120  }
   0x6   :  { %245 = vmatpush.msra.mxu1 %v101_v11  ;;  %v147_v17 = vsel %vm146_vm1, %v243_v16, 0.0  ;;  %21 = vst.msk [vmem:[#allocation2 + $0x8] sm:$0xff] %vm19_vm13, %v301_v15  ;;  %s222_s4 = sshll.u32 %s366_s3, 4  ;;  %s302_s8 = smov [#allocation3]   ;;  %s223_s4 = int_to_ptr.hbm [resolvable:$true] %s222_s4 }
   0x7   :  { %119 = vmatpush.msra.mxu0 %v101_v11  ;;  %vm85_vm12 = vcmp.eq.s32.totalorder %v26_v25, 0  ;;  %20 = vst.msk [vmem:[#allocation2] sm:$0xff] %vm19_vm13, %v301_v15 }
   0x8   :  { %246 = vmatpush.msra.mxu1 %v100_v12 }
   0x9   :  { %120 = vmatpush.msra.mxu0 %v100_v12 }
   0xa   :  { %265 = vset.pattern.permute.xlu0 %v296_v4  ;;  %267 = vset.pattern.permute.xlu1 %v297_v5 }
   0xb   :  { %37 = vperm.xlu0 %265, %v22_v0   ;;  %51 = vperm.xlu1 %267, %v22_v0  }
   0xc   :  { %269 = vset.pattern.permute.xlu2 %v298_v6  ;;  %247 = vmatpush.msra.mxu1 %v99_v13 }
   0xd   :  { %65 = vperm.xlu2 %269, %v22_v0   ;;  %121 = vmatpush.msra.mxu0 %v99_v13  ;;  %v94_v53 = vld [vmem:[#allocation2 + $0x8] sm:$0xff] }
   0xe   :  { %248 = vmatpush.msra.mxu1 %v98_v14  ;;  %v93_v57 = vld [vmem:[#allocation2] sm:$0xff] }
   0xf   :  { %122 = vmatpush.msra.mxu0 %v98_v14 }
  0x10   :  { %249 = vmatpush.msra.mxu1 %v97_v18 }
  0x11   :  { %123 = vmatpush.msra.mxu0 %v97_v18 }
  0x12   :  { %250 = vmatpush.msra.mxu1 %v96_v19 }
  0x13   :  { %272 = vset.pattern.permute.xlu0 %v293_v1  ;;  %270 = vset.pattern.permute.xlu1 %v299_v8 }
  0x14   :  { %88 = vperm.xlu0 %272, %v23_v7   ;;  %72 = vperm.xlu1 %270, %v22_v0  }
  0x15   :  { %271 = vset.pattern.permute.xlu2 %v300_v9  ;;  %124 = vmatpush.msra.mxu0 %v96_v19 }
  0x16   :  { %79 = vperm.xlu2 %271, %v22_v0   ;;  %251 = vmatpush.msra.mxu1 %v95_v20 }
  0x17   :  { %125 = vmatpush.msra.mxu0 %v95_v20 }
  0x3e   :  { %148 = vadd.xlane.f32.xlu1 %v147_v17 }
  0x5e   :  { %v59_v21 = vpop.permute.xlu2 %58 }
  0x5f   :  { %vm60_vm6 = vcmp.eq.s32.totalorder %v59_v21, %v26_v25 }
  0x60   :  { %v236_v37 = vsel %vm60_vm6, 1.0, %v301_v15 }
  0x67   :  { %v66_v26 = vpop.permute.xlu2 %65 }
  0x68   :  { %vm67_vm7 = vcmp.eq.s32.totalorder %v66_v26, %v26_v25 }
  0x69   :  { %v237_v41 = vsel %vm67_vm7, 1.0, %v301_v15 }
  0x70   :  { %v80_v35 = vpop.permute.xlu2 %79 }
  0x71   :  { %vm81_vm8 = vcmp.eq.s32.totalorder %v80_v35, %v26_v25 }
  0x72   :  { %v239_v45 = vsel %vm81_vm8, 1.0, %v301_v15  ;;  %vm202_vm8 = vcmask 7168  }
  0x74   :  { %v31_v23 = vpop.permute.xlu0 %30  ;;  %v45_v24 = vpop.permute.xlu1 %44 }
  0x75   :  { %vm32_vm2 = vcmp.eq.s32.totalorder %v31_v23, %v26_v25  ;;  %vm46_vm3 = vcmp.eq.s32.totalorder %v45_v24, %v26_v25 }
  0x76   :  { %v232_v29 = vsel %vm32_vm2, 1.0, %v301_v15  ;;  %v234_v32 = vsel %vm46_vm3, 1.0, %v301_v15 }
  0x7d   :  { %v38_v27 = vpop.permute.xlu0 %37  ;;  %v52_v28 = vpop.permute.xlu1 %51 }
  0x7e   :  { %vm39_vm4 = vcmp.eq.s32.totalorder %v38_v27, %v26_v25  ;;  %vm53_vm5 = vcmp.eq.s32.totalorder %v52_v28, %v26_v25 }
  0x7f   :  { %v233_v30 = vsel %vm39_vm4, 1.0, %v301_v15  ;;  %v235_v34 = vsel %vm53_vm5, 1.0, %v301_v15 }
  0x80   :  { %v42_v31 = vadd.f32 %v233_v30, %v232_v29 }
  0x82   :  { %v49_v33 = vadd.f32 %v234_v32, %v42_v31 }
  0x84   :  { %v56_v36 = vadd.f32 %v235_v34, %v49_v33 }
  0x86   :  { %v63_v38 = vadd.f32 %v236_v37, %v56_v36  ;;  %v89_v39 = vpop.permute.xlu0 %88  ;;  %v73_v40 = vpop.permute.xlu1 %72 }
  0x87   :  { %vm90_vm10 = vcmp.eq.s32.totalorder %v89_v39, %v26_v25  ;;  %vm74_vm11 = vcmp.eq.s32.totalorder %v73_v40, %v26_v25 }
  0x88   :  { %v70_v42 = vadd.f32 %v237_v41, %v63_v38  ;;  %v240_v43 = vsel %vm90_vm10, 1.0, %v301_v15  ;;  %v238_v44 = vsel %vm74_vm11, 1.0, %v301_v15 }
  0x89   :  { %242 = vmatmul.msk.f32.vlgmr.msra.gmra.mxu1 %vm103_vm9, %v240_v43 }
  0x8a   :  { %v77_v46 = vadd.f32 %v238_v44, %v70_v42 }
  0x8c   :  { %v84_v47 = vadd.f32 %v239_v45, %v77_v46 }
  0x8e   :  { %v86_v48 = vsel %vm85_vm12, 0.0, %v84_v47 }
  0x8f   :  { %241 = vmatmul.msk.f32.vlgmr.msra.gmra.mxu0 %vm103_vm9, %v86_v48 }
  0xb1   :  { %v149_v49 = vpop.xlane.xlu1 %148 }
  0xb2   :  { %v150_v50 = vadd.f32 1e-06, %v149_v49 }
  0xb4   :  { %273 = vrcp.f32 %v150_v50  ;;  %vm156_vm14 = vweird.f32 %v150_v50  ;;  %v162_v61 = vand.u32 2147483648, %v150_v50  ;;  %v160_v63 = vand.u32 2147483647, %v150_v50 }
  0xb6   :  { %v163_v2 = vor.u32 1.1754944e-38, %v162_v61  ;;  %vm161_vm1 = vcmp.eq.f32.partialorder %v160_v63, 8.507059e+37 }
  0xba   :  { %v274_v51 = vpop.eup %273 }
  0xbb   :  { %v152_v52 = vmul.f32 %v274_v51, %v150_v50  ;;  %vm157_vm15 = vweird.f32 %v274_v51 }
  0xbc   :  { %vm158_vm0 = vmor %vm156_vm14, %vm157_vm15 }
  0xbd   :  { %v153_v55 = vsub.f32 1.0, %v152_v52 }
  0xbf   :  { %v154_v58 = vmul.f32 %v274_v51, %v153_v55 }
  0xc1   :  { %v155_v62 = vadd.f32 %v274_v51, %v154_v58 }
  0xc3   :  { %v159_v4 = vsel %vm158_vm0, %v274_v51, %v155_v62 }
  0xc4   :  { %v164_v6 = vsel %vm161_vm1, %v163_v2, %v159_v4 }
 0x106   :  { %v130_v54 = vpop.f32.mrf.mxu1 }
 0x107   :  { %v134_v56 = vadd.f32 %v130_v54, %v94_v53 }
 0x109   :  { %137 = vst.msk [vmem:[#allocation2 + $0x8] sm:$0xff] %vm19_vm13, %v134_v56 }
 0x10c   :  { %v127_v59 = vpop.f32.mrf.mxu0 }
 0x10d   :  { %v133_v60 = vadd.f32 %v127_v59, %v93_v57 }
 0x10f   :  { %136 = vst.msk [vmem:[#allocation2] sm:$0xff] %vm19_vm13, %v133_v60 }
 0x110   :  { %v142_v0 = vld [vmem:[#allocation2 + $0x8] sm:$0xff] }
 0x111   :  { %v174_v1 = vmul.f32 %v142_v0, %v142_v0 }
 0x113   :  { %v175_v3 = vsel %vm19_vm13, %v174_v1, 0.0 }
 0x114   :  { %176 = vadd.xlane.f32.xlu0 %v175_v3 }
 0x116   :  { %v141_v5 = vld [vmem:[#allocation2] sm:$0xff] }
 0x117   :  { %v165_v7 = vmul.f32 %v164_v6, %v141_v5 }
 0x119   :  { %v170_v8 = vmul.f32 %v165_v7, %v165_v7  ;;  %v166_v10 = vmul.f32 %v165_v7, %v142_v0 }
 0x11b   :  { %v171_v9 = vsel %vm19_vm13, %v170_v8, 0.0  ;;  %v167_v11 = vsel %vm19_vm13, %v166_v10, 0.0 }
 0x11c   :  { %172 = vadd.xlane.f32.xlu2 %v171_v9 }
 0x124   :  { %168 = vadd.xlane.f32.xlu2 %v167_v11 }
 0x187   :  { %v177_v12 = vpop.xlane.xlu0 %176 }
 0x188   :  { %v190_v13 = vmax.f32 %v177_v12, 1e-16 }
 0x18a   :  { %275 = vrsqrt.f32 %v190_v13  ;;  %vm197_vm3 = vweird.f32 %v190_v13 }
 0x18f   :  { %v173_v14 = vpop.xlane.xlu2 %172 }
 0x190   :  { %v276_v15 = vpop.eup %275  ;;  %v178_v16 = vmax.f32 %v173_v14, 1e-16 }
 0x191   :  { %v192_v17 = vmul.f32 %v276_v15, %v190_v13  ;;  %vm198_vm4 = vweird.f32 %v276_v15 }
 0x192   :  { %277 = vrsqrt.f32 %v178_v16  ;;  %vm185_vm5 = vweird.f32 %v178_v16  ;;  %vm199_vm7 = vmor %vm197_vm3, %vm198_vm4 }
 0x193   :  { %v193_v18 = vmul.f32 %v276_v15, %v192_v17 }
 0x195   :  { %v194_v20 = vmul.f32 0.5, %v193_v18 }
 0x197   :  { %v195_v23 = vsub.f32 1.5, %v194_v20  ;;  %v169_v29 = vpop.xlane.xlu2 %168 }
 0x198   :  { %v278_v19 = vpop.eup %277 }
 0x199   :  { %v180_v21 = vmul.f32 %v278_v19, %v178_v16  ;;  %vm186_vm2 = vweird.f32 %v278_v19  ;;  %v196_v27 = vmul.f32 %v276_v15, %v195_v23 }
 0x19a   :  { %vm187_vm6 = vmor %vm185_vm5, %vm186_vm2 }
 0x19b   :  { %v181_v22 = vmul.f32 %v278_v19, %v180_v21  ;;  %v200_v31 = vsel %vm199_vm7, %v276_v15, %v196_v27 }
 0x19d   :  { %v182_v24 = vmul.f32 0.5, %v181_v22 }
 0x19f   :  { %v183_v25 = vsub.f32 1.5, %v182_v24 }
 0x1a1   :  { %v184_v26 = vmul.f32 %v278_v19, %v183_v25 }
 0x1a3   :  { %v188_v28 = vsel %vm187_vm6, %v278_v19, %v184_v26 }
 0x1a4   :  { %v189_v30 = vmul.f32 %v188_v28, %v169_v29 }
 0x1a6   :  { %v201_v32 = vmul.f32 %v200_v31, %v189_v30 }
 0x1a8   :  { %v203_v33 = vsel %vm202_vm8, %v201_v32, 0.0 }
 0x1a9   :  { %204 = vadd.xlane.f32.xlu1 %v203_v33 }
 0x21c   :  { %v205_v34 = vpop.xlane.xlu1 %204 }
 0x21d   :  { %v206_v35 = vrot.slane %v205_v34, 4 }
 0x21f   :  { %v207_v36 = vadd.f32 %v206_v35, %v205_v34 }
 0x221   :  { %v208_v37 = vrot.slane %v207_v36, 2 }
 0x223   :  { %v209_v38 = vadd.f32 %v208_v37, %v207_v36 }
 0x225   :  { %v210_v39 = vrot.slane %v209_v38, 1 }
 0x227   :  { %v211_v40 = vadd.f32 %v210_v39, %v209_v38 }
 0x229   :  { %252 = vpush %v211_v40 }
 0x25a   :  { %s253_s5 = spop %252 }
 0x25b   :  { %s213_s6 = ssub.f32 0.0, %s253_s5 }
 0x25d   :  { %s214_s7 = smul.f32 0.125, %s213_s6 }
 0x25f   :  { %216 = sst [smem:[#allocation3]] %s214_s7 }
 0x260   :  { %225 = dma.smem_to_hbm %s302_s8, 16, %s223_s4, [#allocation4]  }
 0x261   :  { %291 = dma.done.wait [#allocation4], 16  }
 0x262   :  { %292 = vsyncadd [#allocation4], 4294967280 }
 0x263   :  { %230 = sfence }
 0x264   :  { %231 = vsyncpa [#allocation4], 1 }

</bundles_post_ra>
